<compile_context>
chip_gen: v7x
topology: tpu7x:2x2x1
jax: 0.10.0
libtpu: 0.0.40
codegen_flags: <defaults>
</compile_context>

<pallas_src>
import functools

import jax
import jax.numpy as jnp
from jax.experimental import pallas as pl
from jax.experimental.pallas import tpu as pltpu


def _dqr_nc3_kernel(x_ref, w1_ref, b1_ref, wv_ref, bv_ref, wd_ref, bd_ref,
                    tri_ref, o_ref, *, compute_dtype):
    # MXU operand dtype is chosen by the wrapper (bf16 fast path or f32);
    # accumulation is always f32 via preferred_element_type.
    x = x_ref[...].astype(compute_dtype)                                  # (tm, D)

    # Shared hidden layer: h = relu(x @ W1 + b1)   (f32 accumulate)
    h = jnp.dot(x, w1_ref[...], preferred_element_type=jnp.float32) + b1_ref[...]
    h = jnp.maximum(h, 0.0)                                               # (tm, H) f32

    # Value head (H -> 1): cheap lane reduction instead of a 1-wide MXU matmul.
    value = jnp.sum(h * wv_ref[...], axis=-1, keepdims=True) + bv_ref[...]  # (tm, 1)

    # Delta head (H -> N) with fused ELU(alpha=1) + 1:
    #   ELU(d) + 1 = d + 1 (d > 0)  |  exp(d) (d <= 0)     -- the -1/+1 cancel.
    d = jnp.dot(h.astype(compute_dtype), wd_ref[...],
                preferred_element_type=jnp.float32) + bd_ref[...]         # (tm, N)
    delta = jnp.where(d > 0.0, d + 1.0, jnp.exp(jnp.minimum(d, 0.0)))     # (tm, N)

    # cumsum along features AND mean-centering fused into one resident matrix:
    #   (csum - mean)[j] = sum_k delta[k] * ((k <= j) - (N - k)/N)
    centered = jnp.dot(delta.astype(compute_dtype), tri_ref[...],
                       preferred_element_type=jnp.float32)                # (tm, N)

    o_ref[...] = (value + centered).astype(o_ref.dtype)


def _round_up(a, b):
    return ((a + b - 1) // b) * b


@functools.partial(jax.jit, static_argnames=("block_rows", "mxu_bf16"))
def dqr_nc3_forward(x, w1, b1, wv, bv, wd, bd, *, block_rows=1024, mxu_bf16=True):
    """Fused DQR_NC3 forward. x: (B, D); returns (B, N)."""
    B, D = x.shape
    H = w1.shape[1]
    N = wd.shape[1]

    # Precomputed, VMEM-resident cumsum + mean-centering matrix (k rows, j cols):
    #   tri_c[k, j] = (k <= j) - (N - k)/N
    k = jnp.arange(N, dtype=jnp.int32)[:, None]
    j = jnp.arange(N, dtype=jnp.int32)[None, :]
    tri_c = (k <= j).astype(jnp.float32) - (N - k).astype(jnp.float32) * (1.0 / N)

    # MXU operand dtype (bf16 fast path; tri_c entries n/256 are exact in bf16).
    wdt = jnp.bfloat16 if mxu_bf16 else x.dtype
    w1_m = w1.astype(wdt)
    wd_m = wd.astype(wdt)
    tri_m = tri_c.astype(wdt)

    # Lane-friendly 2-D views of the small params (contiguous reshape: no copy).
    b1_2d = b1.reshape(1, H)
    wv_2d = wv.reshape(1, H)          # value head stays f32 (VPU lane reduction)
    bv_2d = bv.reshape(1, 1)
    bd_2d = bd.reshape(1, N)

    # Batch tile: multiple of 8 sublanes, large to amortize per-step pipeline
    # overhead, but capped so mid-sized batches still give >=4 grid steps so
    # both v7x TensorCores receive work ("parallel" semantics).  Pallas masks
    # the partial last block, so awkward batch sizes never degrade the tile.
    tm = min(block_rows, _round_up(pl.cdiv(B, 4), 8))
    grid = (pl.cdiv(B, tm),)

    full = lambda i: (0, 0)           # resident blocks: same index every step

    itemsize = jnp.dtype(x.dtype).itemsize
    w_itemsize = jnp.dtype(wdt).itemsize
    # Rough VMEM estimate: double-buffered x/out tiles + (double-buffered)
    # resident params.  Default block_rows=1024 is ~5-6 MiB -> well under the
    # scoped defaults on all generations; only override for very large tiles.
    est_vmem = (2 * tm * (D + N) * itemsize
                + 2 * (D * H + H * N + N * N) * w_itemsize
                + 2 * (3 * H + N + 2) * 4)
    cp_kwargs = dict(dimension_semantics=("parallel",))
    if est_vmem > 24 * 1024 * 1024:
        cp_kwargs["vmem_limit_bytes"] = min(int(est_vmem * 5 // 4),
                                            100 * 1024 * 1024)

    cost = pl.CostEstimate(
        flops=2 * B * (D * H + H * N + N * N + H),
        transcendentals=B * N,
        bytes_accessed=(B * (D + N) * itemsize
                        + (D * H + H * N + N * N) * w_itemsize
                        + (3 * H + N + 2) * 4),
    )

    kernel = functools.partial(_dqr_nc3_kernel, compute_dtype=wdt)

    return pl.pallas_call(
        kernel,
        out_shape=jax.ShapeDtypeStruct((B, N), x.dtype),
        grid_spec=pltpu.PrefetchScalarGridSpec(
            num_scalar_prefetch=0,
            grid=grid,
            in_specs=[
                pl.BlockSpec((tm, D), lambda i: (i, 0)),   # x tile
                pl.BlockSpec((D, H), full),                # W1      (resident)
                pl.BlockSpec((1, H), full),                # b1      (resident)
                pl.BlockSpec((1, H), full),                # Wv row  (resident)
                pl.BlockSpec((1, 1), full),                # bv      (resident)
                pl.BlockSpec((H, N), full),                # Wd      (resident)
                pl.BlockSpec((1, N), full),                # bd      (resident)
                pl.BlockSpec((N, N), full),                # tri_c   (resident)
            ],
            out_specs=pl.BlockSpec((tm, N), lambda i: (i, 0)),
        ),
        compiler_params=pltpu.CompilerParams(**cp_kwargs),
        cost_estimate=cost,
    )(x, w1_m, b1_2d, wv_2d, bv_2d, wd_m, bd_2d, tri_m)


def _reference(x, w1, b1, wv, bv, wd, bd):
    hp = jax.lax.Precision.HIGHEST
    h = jnp.maximum(jnp.dot(x, w1, precision=hp) + b1, 0.0)
    value = jnp.dot(h, wv.reshape(-1, 1), precision=hp) + bv
    d = jnp.dot(h, wd, precision=hp) + bd
    delta = jnp.where(d > 0.0, d, jnp.expm1(d)) + 1.0
    csum = jnp.cumsum(delta, axis=1)
    return value + csum - jnp.mean(csum, axis=1, keepdims=True)


if __name__ == "__main__":
    key = jax.random.PRNGKey(0)
    # width_vec = [256, 256, 256] (module default); small batch for the demo.
    B, D, H, N = 8, 256, 256, 256
    ks = jax.random.split(key, 7)
    s_in = 1.0 / jnp.sqrt(jnp.float32(D))
    s_h = 1.0 / jnp.sqrt(jnp.float32(H))

    x = jax.random.normal(ks[0], (B, D), dtype=jnp.float32)
    w1 = jax.random.normal(ks[1], (D, H), dtype=jnp.float32) * s_in
    b1 = jax.random.normal(ks[2], (H,), dtype=jnp.float32) * s_in
    wv = jax.random.normal(ks[3], (H,), dtype=jnp.float32) * s_h
    bv = jax.random.normal(ks[4], (1,), dtype=jnp.float32) * s_h
    wd = jax.random.normal(ks[5], (H, N), dtype=jnp.float32) * s_h
    bd = jax.random.normal(ks[6], (N,), dtype=jnp.float32) * s_h

    ref = _reference(x, w1, b1, wv, bv, wd, bd)

    # 1) Structure check: f32 MXU operands, tight tolerance.
    y32 = jax.block_until_ready(
        dqr_nc3_forward(x, w1, b1, wv, bv, wd, bd, mxu_bf16=False))
    assert y32.shape == (B, N) and y32.dtype == x.dtype
    err32 = float(jnp.max(jnp.abs(y32 - ref)))
    assert jnp.allclose(y32, ref, atol=2e-2, rtol=2e-3), err32

    # 2) Optimized default path: bf16 MXU operands + f32 accumulation.
    #    bf16 operand rounding is amplified by the 256-deep cumsum, so check
    #    against a tolerance scaled by the output magnitude (~0.5% of scale).
    y = jax.block_until_ready(dqr_nc3_forward(x, w1, b1, wv, bv, wd, bd))
    assert y.shape == (B, N) and y.dtype == x.dtype
    err = float(jnp.max(jnp.abs(y - ref)))
    scale = float(jnp.max(jnp.abs(ref)))
    assert err <= 1e-2 * scale + 0.1, (err, scale)

    print("KERNEL_OK")
</pallas_src>

<mosaic_0001>
module attributes {stable_mosaic.version = 11 : i64} {
  func.func @_dqr_nc3_kernel(%arg0: i32, %arg1: memref<8x256xf32, #tpu.memory_space<vmem>>, %arg2: memref<256x256xf32, #tpu.memory_space<vmem>>, %arg3: memref<1x256xf32, #tpu.memory_space<vmem>>, %arg4: memref<1x256xf32, #tpu.memory_space<vmem>>, %arg5: memref<1x1xf32, #tpu.memory_space<vmem>>, %arg6: memref<256x256xf32, #tpu.memory_space<vmem>>, %arg7: memref<1x256xf32, #tpu.memory_space<vmem>>, %arg8: memref<256x256xf32, #tpu.memory_space<vmem>>, %arg9: memref<8x256xf32, #tpu.memory_space<vmem>>) attributes {dimension_semantics = [#tpu.dimension_semantics<parallel>], iteration_bounds = array<i64: 1>, scalar_prefetch = 0 : i64, scratch_operands = 0 : i64, tpu.core_type = #tpu.core_type<tc>, window_params = [{transform_indices = @transform_0, window_bounds = array<i64: 8, 256>}, {pipeline_mode = #tpu.pipeline_mode<synchronous>, transform_indices = @transform_1, window_bounds = array<i64: 256, 256>}, {pipeline_mode = #tpu.pipeline_mode<synchronous>, transform_indices = @transform_2, window_bounds = array<i64: 1, 256>}, {pipeline_mode = #tpu.pipeline_mode<synchronous>, transform_indices = @transform_3, window_bounds = array<i64: 1, 256>}, {pipeline_mode = #tpu.pipeline_mode<synchronous>, transform_indices = @transform_4, window_bounds = array<i64: 1, 1>}, {pipeline_mode = #tpu.pipeline_mode<synchronous>, transform_indices = @transform_5, window_bounds = array<i64: 256, 256>}, {pipeline_mode = #tpu.pipeline_mode<synchronous>, transform_indices = @transform_6, window_bounds = array<i64: 1, 256>}, {pipeline_mode = #tpu.pipeline_mode<synchronous>, transform_indices = @transform_7, window_bounds = array<i64: 256, 256>}, {transform_indices = @transform_8, window_bounds = array<i64: 8, 256>}]} {
    %c0 = arith.constant 0 : index
    %c0_0 = arith.constant 0 : index
    %0 = vector.load %arg1[%c0, %c0_0] : memref<8x256xf32, #tpu.memory_space<vmem>>, vector<8x256xf32>
    %c0_1 = arith.constant 0 : index
    %c0_2 = arith.constant 0 : index
    %1 = vector.load %arg2[%c0_1, %c0_2] : memref<256x256xf32, #tpu.memory_space<vmem>>, vector<256x256xf32>
    %cst = arith.constant dense<0.000000e+00> : vector<8x256xf32>
    %2 = tpu.matmul %0, %1, %cst {dimension_numbers = #tpu.dot_dimension_numbers<[1], [0], [0], [1], [0, 0, 1, 1], [], []>} : vector<8x256xf32>, vector<256x256xf32>, vector<8x256xf32> -> vector<8x256xf32>
    %c0_3 = arith.constant 0 : index
    %c0_4 = arith.constant 0 : index
    %3 = vector.load %arg3[%c0_3, %c0_4] : memref<1x256xf32, #tpu.memory_space<vmem>>, vector<1x256xf32>
    %4 = vector.broadcast %3 : vector<1x256xf32> to vector<8x256xf32>
    %5 = arith.addf %2, %4 : vector<8x256xf32>
    %cst_5 = arith.constant 0.000000e+00 : f32
    %6 = vector.broadcast %cst_5 : f32 to vector<8x256xf32>
    %7 = arith.maximumf %5, %6 : vector<8x256xf32>
    %c0_6 = arith.constant 0 : index
    %c0_7 = arith.constant 0 : index
    %8 = vector.load %arg4[%c0_6, %c0_7] : memref<1x256xf32, #tpu.memory_space<vmem>>, vector<1x256xf32>
    %9 = vector.broadcast %8 : vector<1x256xf32> to vector<8x256xf32>
    %10 = arith.mulf %7, %9 : vector<8x256xf32>
    %cst_8 = arith.constant dense<0.000000e+00> : vector<8xf32>
    %11 = vector.multi_reduction <add>, %10, %cst_8 [1] : vector<8x256xf32> to vector<8xf32>
    %12 = vector.shape_cast %11 : vector<8xf32> to vector<8x1xf32>
    %c0_9 = arith.constant 0 : index
    %c0_10 = arith.constant 0 : index
    %13 = vector.load %arg5[%c0_9, %c0_10] : memref<1x1xf32, #tpu.memory_space<vmem>>, vector<1x1xf32>
    %14 = vector.broadcast %13 : vector<1x1xf32> to vector<8x1xf32>
    %15 = arith.addf %12, %14 : vector<8x1xf32>
    %c0_11 = arith.constant 0 : index
    %c0_12 = arith.constant 0 : index
    %16 = vector.load %arg6[%c0_11, %c0_12] : memref<256x256xf32, #tpu.memory_space<vmem>>, vector<256x256xf32>
    %cst_13 = arith.constant dense<0.000000e+00> : vector<8x256xf32>
    %17 = tpu.matmul %7, %16, %cst_13 {dimension_numbers = #tpu.dot_dimension_numbers<[1], [0], [0], [1], [0, 0, 1, 1], [], []>} : vector<8x256xf32>, vector<256x256xf32>, vector<8x256xf32> -> vector<8x256xf32>
    %c0_14 = arith.constant 0 : index
    %c0_15 = arith.constant 0 : index
    %18 = vector.load %arg7[%c0_14, %c0_15] : memref<1x256xf32, #tpu.memory_space<vmem>>, vector<1x256xf32>
    %19 = vector.broadcast %18 : vector<1x256xf32> to vector<8x256xf32>
    %20 = arith.addf %17, %19 : vector<8x256xf32>
    %cst_16 = arith.constant 0.000000e+00 : f32
    %21 = vector.broadcast %cst_16 : f32 to vector<8x256xf32>
    %22 = arith.cmpf ogt, %20, %21 : vector<8x256xf32>
    %cst_17 = arith.constant 1.000000e+00 : f32
    %23 = vector.broadcast %cst_17 : f32 to vector<8x256xf32>
    %24 = arith.addf %20, %23 : vector<8x256xf32>
    %cst_18 = arith.constant 0.000000e+00 : f32
    %25 = vector.broadcast %cst_18 : f32 to vector<8x256xf32>
    %26 = arith.minimumf %20, %25 : vector<8x256xf32>
    %27 = math.exp %26 : vector<8x256xf32>
    %28 = arith.select %22, %24, %27 : vector<8x256xi1>, vector<8x256xf32>
    %c0_19 = arith.constant 0 : index
    %c0_20 = arith.constant 0 : index
    %29 = vector.load %arg8[%c0_19, %c0_20] : memref<256x256xf32, #tpu.memory_space<vmem>>, vector<256x256xf32>
    %cst_21 = arith.constant dense<0.000000e+00> : vector<8x256xf32>
    %30 = tpu.matmul %28, %29, %cst_21 {dimension_numbers = #tpu.dot_dimension_numbers<[1], [0], [0], [1], [0, 0, 1, 1], [], []>} : vector<8x256xf32>, vector<256x256xf32>, vector<8x256xf32> -> vector<8x256xf32>
    %31 = vector.broadcast %15 : vector<8x1xf32> to vector<8x256xf32>
    %32 = arith.addf %31, %30 : vector<8x256xf32>
    %c0_22 = arith.constant 0 : index
    %c0_23 = arith.constant 0 : index
    %33 = vector.load %arg9[%c0_22, %c0_23] : memref<8x256xf32, #tpu.memory_space<vmem>>, vector<8x256xf32>
    tpu.vector_store %arg9[%c0_22, %c0_23], %32 {strides = array<i32>} : memref<8x256xf32, #tpu.memory_space<vmem>>, vector<8x256xf32>,
    return
  }
  func.func @transform_0(%arg0: i32) -> (i32, i32) {
    %c0_i32 = arith.constant 0 : i32
    %c0_i32_0 = arith.constant 0 : i32
    return %arg0, %c0_i32 : i32, i32
  }
  func.func @transform_1(%arg0: i32) -> (i32, i32) {
    %c0_i32 = arith.constant 0 : i32
    %c0_i32_0 = arith.constant 0 : i32
    %c0_i32_1 = arith.constant 0 : i32
    return %c0_i32, %c0_i32_0 : i32, i32
  }
  func.func @transform_2(%arg0: i32) -> (i32, i32) {
    %c0_i32 = arith.constant 0 : i32
    %c0_i32_0 = arith.constant 0 : i32
    %c0_i32_1 = arith.constant 0 : i32
    return %c0_i32, %c0_i32_0 : i32, i32
  }
  func.func @transform_3(%arg0: i32) -> (i32, i32) {
    %c0_i32 = arith.constant 0 : i32
    %c0_i32_0 = arith.constant 0 : i32
    %c0_i32_1 = arith.constant 0 : i32
    return %c0_i32, %c0_i32_0 : i32, i32
  }
  func.func @transform_4(%arg0: i32) -> (i32, i32) {
    %c0_i32 = arith.constant 0 : i32
    %c0_i32_0 = arith.constant 0 : i32
    %c0_i32_1 = arith.constant 0 : i32
    return %c0_i32, %c0_i32_0 : i32, i32
  }
  func.func @transform_5(%arg0: i32) -> (i32, i32) {
    %c0_i32 = arith.constant 0 : i32
    %c0_i32_0 = arith.constant 0 : i32
    %c0_i32_1 = arith.constant 0 : i32
    return %c0_i32, %c0_i32_0 : i32, i32
  }
  func.func @transform_6(%arg0: i32) -> (i32, i32) {
    %c0_i32 = arith.constant 0 : i32
    %c0_i32_0 = arith.constant 0 : i32
    %c0_i32_1 = arith.constant 0 : i32
    return %c0_i32, %c0_i32_0 : i32, i32
  }
  func.func @transform_7(%arg0: i32) -> (i32, i32) {
    %c0_i32 = arith.constant 0 : i32
    %c0_i32_0 = arith.constant 0 : i32
    %c0_i32_1 = arith.constant 0 : i32
    return %c0_i32, %c0_i32_0 : i32, i32
  }
  func.func @transform_8(%arg0: i32) -> (i32, i32) {
    %c0_i32 = arith.constant 0 : i32
    %c0_i32_0 = arith.constant 0 : i32
    return %arg0, %c0_i32 : i32, i32
  }
}

</mosaic_0001>

<bundles_post_ra>
// kernel: dqr_nc3_forward.1
= control target key start
LH: loop header
LB: loop body
LE: loop exit
PB: predicated region body
PF: predicated region fallthrough
CT: control target
= control target key end

     0   :  { %s1277_s0 = inlined_call_operand.vmem [shape: f32[8,256], index: 0, kind: input, shape index: {}]   ;;  %s1278_s1 = inlined_call_operand.vmem [shape: f32[256,256], index: 1, kind: input, shape index: {}]   ;;  %s1279_s2 = inlined_call_operand.vmem [shape: f32[1,256], index: 2, kind: input, shape index: {}]   ;;  %s1280_s3 = inlined_call_operand.vmem [shape: f32[1,256], index: 3, kind: input, shape index: {}]   ;;  %s1281_s4 = inlined_call_operand.<no memory space> [shape: f32[1,1], index: 4, kind: input, shape index: {}]   ;;  %s1282_s5 = inlined_call_operand.hbm [shape: f32[256,256], index: 5, kind: input, shape index: {}]   ;;  %s1283_s6 = inlined_call_operand.vmem [shape: f32[1,256], index: 6, kind: input, shape index: {}]   ;;  %s1284_s7 = inlined_call_operand.vmem [shape: f32[256,256], index: 7, kind: input, shape index: {}]   ;;  %s1285_s8 = inlined_call_operand.hbm [shape: f32[8,256], index: 8, kind: output, shape index: {}]  }
   0x1   :  { %v13_v0 = vstv %s1281_s4 }
   0x2   :  { %14 = vst [vmem:[#allocation2] sm:$0x1] %v13_v0 }
   0x3   :  { %15 = vsyncpa [#allocation4], 0 }
   0x4   :  { %16 = vsyncpa [#allocation5], 0  ;;  %s791_s29 = smov [#allocation3]   ;;  %s743_s11 = scalar_lea.hbm %s1282_s5, 8192 }
   0x5   :  { %s32_s30 = sshll.u32 %s791_s29, 4  ;;  %p744_p0 = scmp.ne.s32.totalorder %s1282_s5, %s743_s11  ;;  %s33_s30 = int_to_ptr.vmem [resolvable:$true] %s32_s30 }
   0x6   :  { %p747_p1 = scmp.lt.u32.totalorder %s743_s11, %s1282_s5 }
   0x8   :  { %p749_p2 = pnand %p747_p1, %p744_p0 }
   0xa   :  { %752 = shalt.err (!%p749_p2)
}
   0xb   :  { %s753_s4 = scalar_lea.vmem %s33_s30, 8192  ;;  %p758_p4 = scmp.lt.s32.totalorder %s33_s30, %s33_s30 }
   0xc   :  { %p754_p3 = scmp.ne.s32.totalorder %s33_s30, %s753_s4  ;;  %p759_p5 = scmp.lt.s32.totalorder %s753_s4, %s753_s4 }
   0xe   :  { %p760_p6 = por %p759_p5, %p758_p4 }
  0x10   :  { %p761_p7 = pnand %p760_p6, %p754_p3 }
  0x12   :  { %764 = shalt.err (!%p761_p7)
}
  0x13   :  { %s792_s16 = smov 256   ;;  %s793_s17 = smov 16  }
  0x14   :  { %38 = dma.hbm_to_vmem [thread:$0]  %s1282_s5, 8192, %s33_s30, [#allocation4], %s792_s16, %s792_s16, %s793_s17  }
  0x15   :  { %787 = dma.done.wait [#allocation4], 8192  }
  0x16   :  { %788 = vsyncadd [#allocation4], 4294959104  ;;  %v49_v1 = vld [vmem:[%s1278_s1 + $0x8] sm:$0xff]  ;;  %v51_v2 = vld [vmem:[%s1278_s1 + $0x18] sm:$0xff] }
  0x17   :  { %v48_v3 = vld [vmem:[%s1278_s1] sm:$0xff]  ;;  %v541_v4 = vpack.c.bf16 %v51_v2, %v49_v1  ;;  %v50_v5 = vld [vmem:[%s1278_s1 + $0x10] sm:$0xff]  ;;  %v53_v6 = vld [vmem:[%s1278_s1 + $0x28] sm:$0xff] }
  0x18   :  { %v55_v7 = vld [vmem:[%s1278_s1 + $0x38] sm:$0xff]  ;;  %v543_v8 = vpack.c.bf16 %v50_v5, %v48_v3  ;;  %v52_v10 = vld [vmem:[%s1278_s1 + $0x20] sm:$0xff]  ;;  %v54_v11 = vld [vmem:[%s1278_s1 + $0x30] sm:$0xff] }
  0x19   :  { %v545_v9 = vpack.c.bf16 %v55_v7, %v53_v6  ;;  %v57_v12 = vld [vmem:[%s1278_s1 + $0x48] sm:$0xff]  ;;  %542 = vmatprep.subr.bf16.mxu0 %v541_v4  ;;  %v59_v13 = vld [vmem:[%s1278_s1 + $0x58] sm:$0xff]  ;;  %v547_v14 = vpack.c.bf16 %v54_v11, %v52_v10  ;;  %v56_v16 = vld [vmem:[%s1278_s1 + $0x40] sm:$0xff] }
  0x1a   :  { %544 = vmatpush1.bf16.msra.mxu0 %v543_v8  ;;  %v549_v15 = vpack.c.bf16 %v59_v13, %v57_v12  ;;  %v58_v17 = vld [vmem:[%s1278_s1 + $0x50] sm:$0xff]  ;;  %v61_v18 = vld [vmem:[%s1278_s1 + $0x68] sm:$0xff]  ;;  %v63_v19 = vld [vmem:[%s1278_s1 + $0x78] sm:$0xff] }
  0x1b   :  { %546 = vmatprep.subr.bf16.mxu0 %v545_v9  ;;  %v551_v20 = vpack.c.bf16 %v58_v17, %v56_v16  ;;  %v553_v21 = vpack.c.bf16 %v63_v19, %v61_v18  ;;  %v60_v22 = vld [vmem:[%s1278_s1 + $0x60] sm:$0xff]  ;;  %v62_v23 = vld [vmem:[%s1278_s1 + $0x70] sm:$0xff]  ;;  %v65_v24 = vld [vmem:[%s1278_s1 + $0x88] sm:$0xff] }
  0x1c   :  { %v67_v25 = vld [vmem:[%s1278_s1 + $0x98] sm:$0xff]  ;;  %v555_v26 = vpack.c.bf16 %v62_v23, %v60_v22  ;;  %v64_v28 = vld [vmem:[%s1278_s1 + $0x80] sm:$0xff]  ;;  %v66_v29 = vld [vmem:[%s1278_s1 + $0x90] sm:$0xff] }
  0x1d   :  { %v557_v27 = vpack.c.bf16 %v67_v25, %v65_v24  ;;  %v69_v30 = vld [vmem:[%s1278_s1 + $0xa8] sm:$0xff]  ;;  %v71_v31 = vld [vmem:[%s1278_s1 + $0xb8] sm:$0xff]  ;;  %v559_v32 = vpack.c.bf16 %v66_v29, %v64_v28  ;;  %v68_v34 = vld [vmem:[%s1278_s1 + $0xa0] sm:$0xff] }
  0x1e   :  { %548 = vmatpush1.bf16.msra.mxu0 %v547_v14  ;;  %v561_v33 = vpack.c.bf16 %v71_v31, %v69_v30  ;;  %v70_v35 = vld [vmem:[%s1278_s1 + $0xb0] sm:$0xff]  ;;  %v73_v36 = vld [vmem:[%s1278_s1 + $0xc8] sm:$0xff]  ;;  %v75_v37 = vld [vmem:[%s1278_s1 + $0xd8] sm:$0xff] }
  0x1f   :  { %550 = vmatprep.subr.bf16.mxu0 %v549_v15  ;;  %v563_v38 = vpack.c.bf16 %v70_v35, %v68_v34  ;;  %v72_v39 = vld [vmem:[%s1278_s1 + $0xc0] sm:$0xff]  ;;  %v74_v40 = vld [vmem:[%s1278_s1 + $0xd0] sm:$0xff]  ;;  %v565_v41 = vpack.c.bf16 %v75_v37, %v73_v36  ;;  %v77_v42 = vld [vmem:[%s1278_s1 + $0xe8] sm:$0xff] }
  0x20   :  { %v79_v43 = vld [vmem:[%s1278_s1 + $0xf8] sm:$0xff]  ;;  %v47_v44 = vld [vmem:[%s1277_s0 + $0x8] sm:$0xff]  ;;  %v567_v52 = vpack.c.bf16 %v74_v40, %v72_v39  ;;  %v76_v59 = vld [vmem:[%s1278_s1 + $0xe0] sm:$0xff] }
  0x21   :  { %188 = vmatprep.mubr.f32.mxu0 %v47_v44  ;;  %v223_v45 = vld [vmem:[#allocation3 + $0x8] sm:$0xff]  ;;  %v225_v46 = vld [vmem:[#allocation3 + $0x18] sm:$0xff]  ;;  %v222_v47 = vld [vmem:[#allocation3] sm:$0xff]  ;;  %v569_v58 = vpack.c.bf16 %v79_v43, %v77_v42 }
  0x22   :  { %552 = vmatpush1.bf16.msra.mxu0 %v551_v20  ;;  %v605_v48 = vpack.c.bf16 %v225_v46, %v223_v45  ;;  %v224_v49 = vld [vmem:[#allocation3 + $0x10] sm:$0xff]  ;;  %v227_v50 = vld [vmem:[#allocation3 + $0x28] sm:$0xff]  ;;  %v229_v51 = vld [vmem:[#allocation3 + $0x38] sm:$0xff] }
  0x23   :  { %554 = vmatprep.subr.bf16.mxu0 %v553_v21  ;;  %v607_v53 = vpack.c.bf16 %v224_v49, %v222_v47  ;;  %v609_v54 = vpack.c.bf16 %v229_v51, %v227_v50  ;;  %v226_v55 = vld [vmem:[#allocation3 + $0x20] sm:$0xff]  ;;  %v228_v56 = vld [vmem:[#allocation3 + $0x30] sm:$0xff]  ;;  %v231_v57 = vld [vmem:[#allocation3 + $0x48] sm:$0xff] }
  0x24   :  { %v78_v60 = vld [vmem:[%s1278_s1 + $0xf0] sm:$0xff]  ;;  %606 = vmatprep.subr.bf16.mxu1 %v605_v48  ;;  %v233_v61 = vld [vmem:[#allocation3 + $0x58] sm:$0xff]  ;;  %v81_v62 = vld [vmem:[%s1278_s1 + $0x108] sm:$0xff]  ;;  %v611_v0 = vpack.c.bf16 %v228_v56, %v226_v55 }
  0x25   :  { %v83_v63 = vld [vmem:[%s1278_s1 + $0x118] sm:$0xff]  ;;  %608 = vmatpush1.bf16.msra.mxu1 %v607_v53  ;;  %v613_v1 = vpack.c.bf16 %v233_v61, %v231_v57  ;;  %v230_v2 = vld [vmem:[#allocation3 + $0x40] sm:$0xff]  ;;  %v571_v4 = vpack.c.bf16 %v78_v60, %v76_v59  ;;  %v235_v5 = vld [vmem:[#allocation3 + $0x68] sm:$0xff] }
  0x26   :  { %556 = vmatpush1.bf16.msra.mxu0 %v555_v26  ;;  %610 = vmatprep.subr.bf16.mxu1 %v609_v54  ;;  %v232_v3 = vld [vmem:[#allocation3 + $0x50] sm:$0xff]  ;;  %v237_v6 = vld [vmem:[#allocation3 + $0x78] sm:$0xff]  ;;  %v573_v7 = vpack.c.bf16 %v83_v63, %v81_v62  ;;  %v85_v10 = vld [vmem:[%s1278_s1 + $0x128] sm:$0xff] }
  0x27   :  { %558 = vmatprep.subr.bf16.mxu0 %v557_v27  ;;  %v80_v8 = vld [vmem:[%s1278_s1 + $0x100] sm:$0xff]  ;;  %v82_v9 = vld [vmem:[%s1278_s1 + $0x110] sm:$0xff]  ;;  %v87_v11 = vld [vmem:[%s1278_s1 + $0x138] sm:$0xff]  ;;  %v615_v12 = vpack.c.bf16 %v232_v3, %v230_v2  ;;  %v617_v13 = vpack.c.bf16 %v237_v6, %v235_v5 }
  0x28   :  { %v234_v14 = vld [vmem:[#allocation3 + $0x60] sm:$0xff]  ;;  %v236_v15 = vld [vmem:[#allocation3 + $0x70] sm:$0xff]  ;;  %v575_v16 = vpack.c.bf16 %v82_v9, %v80_v8  ;;  %v239_v17 = vld [vmem:[#allocation3 + $0x88] sm:$0xff]  ;;  %v577_v19 = vpack.c.bf16 %v87_v11, %v85_v10 }
  0x29   :  { %612 = vmatpush1.bf16.msra.mxu1 %v611_v0  ;;  %v241_v18 = vld [vmem:[#allocation3 + $0x98] sm:$0xff]  ;;  %v86_v21 = vld [vmem:[%s1278_s1 + $0x130] sm:$0xff]  ;;  %v89_v22 = vld [vmem:[%s1278_s1 + $0x148] sm:$0xff]  ;;  %v619_v24 = vpack.c.bf16 %v236_v15, %v234_v14 }
  0x2a   :  { %560 = vmatpush1.bf16.msra.mxu0 %v559_v32  ;;  %614 = vmatprep.subr.bf16.mxu1 %v613_v1  ;;  %v84_v20 = vld [vmem:[%s1278_s1 + $0x120] sm:$0xff]  ;;  %v91_v23 = vld [vmem:[%s1278_s1 + $0x158] sm:$0xff]  ;;  %v621_v25 = vpack.c.bf16 %v241_v18, %v239_v17  ;;  %v243_v29 = vld [vmem:[#allocation3 + $0xa8] sm:$0xff] }
  0x2b   :  { %562 = vmatprep.subr.bf16.mxu0 %v561_v33  ;;  %v238_v26 = vld [vmem:[#allocation3 + $0x80] sm:$0xff]  ;;  %v240_v27 = vld [vmem:[#allocation3 + $0x90] sm:$0xff]  ;;  %v579_v28 = vpack.c.bf16 %v86_v21, %v84_v20  ;;  %v245_v30 = vld [vmem:[#allocation3 + $0xb8] sm:$0xff]  ;;  %v581_v31 = vpack.c.bf16 %v91_v23, %v89_v22 }
  0x2c   :  { %v88_v32 = vld [vmem:[%s1278_s1 + $0x140] sm:$0xff]  ;;  %v90_v33 = vld [vmem:[%s1278_s1 + $0x150] sm:$0xff]  ;;  %v93_v34 = vld [vmem:[%s1278_s1 + $0x168] sm:$0xff]  ;;  %v623_v36 = vpack.c.bf16 %v240_v27, %v238_v26  ;;  %v625_v37 = vpack.c.bf16 %v245_v30, %v243_v29 }
  0x2d   :  { %616 = vmatpush1.bf16.msra.mxu1 %v615_v12  ;;  %v95_v35 = vld [vmem:[%s1278_s1 + $0x178] sm:$0xff]  ;;  %v583_v40 = vpack.c.bf16 %v90_v33, %v88_v32  ;;  %v92_v44 = vld [vmem:[%s1278_s1 + $0x160] sm:$0xff]  ;;  %v94_v45 = vld [vmem:[%s1278_s1 + $0x170] sm:$0xff] }
  0x2e   :  { %564 = vmatpush1.bf16.msra.mxu0 %v563_v38  ;;  %618 = vmatprep.subr.bf16.mxu1 %v617_v13  ;;  %v242_v38 = vld [vmem:[#allocation3 + $0xa0] sm:$0xff]  ;;  %v244_v39 = vld [vmem:[#allocation3 + $0xb0] sm:$0xff]  ;;  %v249_v42 = vld [vmem:[#allocation3 + $0xd8] sm:$0xff]  ;;  %v585_v43 = vpack.c.bf16 %v95_v35, %v93_v34 }
  0x2f   :  { %566 = vmatprep.subr.bf16.mxu0 %v565_v41  ;;  %v247_v41 = vld [vmem:[#allocation3 + $0xc8] sm:$0xff]  ;;  %v99_v47 = vld [vmem:[%s1278_s1 + $0x198] sm:$0xff]  ;;  %v627_v48 = vpack.c.bf16 %v244_v39, %v242_v38  ;;  %v246_v50 = vld [vmem:[#allocation3 + $0xc0] sm:$0xff] }
  0x30   :  { %v97_v46 = vld [vmem:[%s1278_s1 + $0x188] sm:$0xff]  ;;  %v629_v49 = vpack.c.bf16 %v249_v42, %v247_v41  ;;  %v248_v51 = vld [vmem:[#allocation3 + $0xd0] sm:$0xff]  ;;  %v253_v54 = vld [vmem:[#allocation3 + $0xf8] sm:$0xff] }
  0x31   :  { %620 = vmatpush1.bf16.msra.mxu1 %v619_v24  ;;  %v251_v53 = vld [vmem:[#allocation3 + $0xe8] sm:$0xff]  ;;  %v589_v55 = vpack.c.bf16 %v99_v47, %v97_v46  ;;  %v96_v56 = vld [vmem:[%s1278_s1 + $0x180] sm:$0xff]  ;;  %v103_v59 = vld [vmem:[%s1278_s1 + $0x1b8] sm:$0xff]  ;;  %v631_v60 = vpack.c.bf16 %v248_v51, %v246_v50 }
  0x32   :  { %568 = vmatpush1.bf16.msra.mxu0 %v567_v52  ;;  %622 = vmatprep.subr.bf16.mxu1 %v621_v25  ;;  %v587_v52 = vpack.c.bf16 %v94_v45, %v92_v44  ;;  %v98_v57 = vld [vmem:[%s1278_s1 + $0x190] sm:$0xff]  ;;  %v633_v61 = vpack.c.bf16 %v253_v54, %v251_v53  ;;  %v250_v62 = vld [vmem:[#allocation3 + $0xe0] sm:$0xff]  ;;  %v257_v2 = vld [vmem:[#allocation3 + $0x118] sm:$0xff] }
  0x33   :  { %570 = vmatprep.subr.bf16.mxu0 %v569_v58  ;;  %v101_v58 = vld [vmem:[%s1278_s1 + $0x1a8] sm:$0xff]  ;;  %v252_v63 = vld [vmem:[#allocation3 + $0xf0] sm:$0xff]  ;;  %v591_v0 = vpack.c.bf16 %v98_v57, %v96_v56  ;;  %v261_v14 = vld [vmem:[#allocation3 + $0x138] sm:$0xff] }
  0x34   :  { %v255_v1 = vld [vmem:[#allocation3 + $0x108] sm:$0xff]  ;;  %v593_v3 = vpack.c.bf16 %v103_v59, %v101_v58  ;;  %v635_v8 = vpack.c.bf16 %v252_v63, %v250_v62  ;;  %v254_v10 = vld [vmem:[#allocation3 + $0x100] sm:$0xff]  ;;  %v256_v11 = vld [vmem:[#allocation3 + $0x110] sm:$0xff] }
  0x35   :  { %624 = vmatpush1.bf16.msra.mxu1 %v623_v36  ;;  %v102_v5 = vld [vmem:[%s1278_s1 + $0x1b0] sm:$0xff]  ;;  %v105_v6 = vld [vmem:[%s1278_s1 + $0x1c8] sm:$0xff]  ;;  %v637_v9 = vpack.c.bf16 %v257_v2, %v255_v1  ;;  %v639_v20 = vpack.c.bf16 %v256_v11, %v254_v10  ;;  %v265_v26 = vld [vmem:[#allocation3 + $0x158] sm:$0xff] }
  0x36   :  { %572 = vmatpush1.bf16.msra.mxu0 %v571_v4  ;;  %626 = vmatprep.subr.bf16.mxu1 %v625_v37  ;;  %v100_v4 = vld [vmem:[%s1278_s1 + $0x1a0] sm:$0xff]  ;;  %v259_v13 = vld [vmem:[#allocation3 + $0x128] sm:$0xff]  ;;  %v260_v23 = vld [vmem:[#allocation3 + $0x130] sm:$0xff] }
  0x37   :  { %574 = vmatprep.subr.bf16.mxu0 %v573_v7  ;;  %v107_v7 = vld [vmem:[%s1278_s1 + $0x1d8] sm:$0xff]  ;;  %v595_v12 = vpack.c.bf16 %v102_v5, %v100_v4  ;;  %v106_v17 = vld [vmem:[%s1278_s1 + $0x1d0] sm:$0xff]  ;;  %v109_v18 = vld [vmem:[%s1278_s1 + $0x1e8] sm:$0xff]  ;;  %v641_v21 = vpack.c.bf16 %v261_v14, %v259_v13 }
  0x38   :  { %v597_v15 = vpack.c.bf16 %v107_v7, %v105_v6  ;;  %v258_v22 = vld [vmem:[#allocation3 + $0x120] sm:$0xff]  ;;  %v263_v25 = vld [vmem:[#allocation3 + $0x148] sm:$0xff]  ;;  %v264_v33 = vld [vmem:[#allocation3 + $0x150] sm:$0xff] }
  0x39   :  { %628 = vmatpush1.bf16.msra.mxu1 %v627_v48  ;;  %v110_v29 = vld [vmem:[%s1278_s1 + $0x1f0] sm:$0xff]  ;;  %v643_v30 = vpack.c.bf16 %v260_v23, %v258_v22  ;;  %v262_v32 = vld [vmem:[#allocation3 + $0x140] sm:$0xff]  ;;  %v269_v36 = vld [vmem:[#allocation3 + $0x178] sm:$0xff]  ;;  %v794_v22 = vmov 0  }
  0x3a   :  { %576 = vmatpush1.bf16.msra.mxu0 %v575_v16  ;;  %630 = vmatprep.subr.bf16.mxu1 %v629_v49  ;;  %v104_v16 = vld [vmem:[%s1278_s1 + $0x1c0] sm:$0xff]  ;;  %v267_v35 = vld [vmem:[#allocation3 + $0x168] sm:$0xff]  ;;  %v647_v37 = vpack.c.bf16 %v264_v33, %v262_v32  ;;  %v272_v47 = vld [vmem:[#allocation3 + $0x190] sm:$0xff] }
  0x3b   :  { %578 = vmatprep.subr.bf16.mxu0 %v577_v19  ;;  %v111_v19 = vld [vmem:[%s1278_s1 + $0x1f8] sm:$0xff]  ;;  %v599_v24 = vpack.c.bf16 %v106_v17, %v104_v16  ;;  %v649_v38 = vpack.c.bf16 %v269_v36, %v267_v35  ;;  %v266_v39 = vld [vmem:[#allocation3 + $0x160] sm:$0xff]  ;;  %v271_v42 = vld [vmem:[#allocation3 + $0x188] sm:$0xff]  ;;  %738 = vset.pattern.permute.xlu0 %v794_v22 }
  0x3c   :  { %v601_v27 = vpack.c.bf16 %v111_v19, %v109_v18  ;;  %v46_v41 = vld [vmem:[%s1277_s0] sm:$0xff]  ;;  %v275_v48 = vld [vmem:[#allocation3 + $0x1a8] sm:$0xff]  ;;  %v276_v53 = vld [vmem:[#allocation3 + $0x1b0] sm:$0xff] }
  0x3d   :  { %632 = vmatpush1.bf16.msra.mxu1 %v631_v60  ;;  %v270_v46 = vld [vmem:[#allocation3 + $0x180] sm:$0xff]  ;;  %v277_v49 = vld [vmem:[#allocation3 + $0x1b8] sm:$0xff]  ;;  %v279_v54 = vld [vmem:[#allocation3 + $0x1c8] sm:$0xff] }
  0x3e   :  { %580 = vmatpush1.bf16.msra.mxu0 %v579_v28  ;;  %634 = vmatprep.subr.bf16.mxu1 %v633_v61  ;;  %v108_v28 = vld [vmem:[%s1278_s1 + $0x1e0] sm:$0xff]  ;;  %v655_v50 = vpack.c.bf16 %v272_v47, %v270_v46  ;;  %v657_v51 = vpack.c.bf16 %v277_v49, %v275_v48  ;;  %v280_v59 = vld [vmem:[#allocation3 + $0x1d0] sm:$0xff]  ;;  %v283_v61 = vld [vmem:[#allocation3 + $0x1e8] sm:$0xff] }
  0x3f   :  { %582 = vmatprep.subr.bf16.mxu0 %v581_v31  ;;  %v645_v31 = vpack.c.bf16 %v265_v26, %v263_v25  ;;  %v603_v34 = vpack.c.bf16 %v110_v29, %v108_v28  ;;  %v278_v58 = vld [vmem:[#allocation3 + $0x1c0] sm:$0xff]  ;;  %v285_v62 = vld [vmem:[#allocation3 + $0x1f8] sm:$0xff]  ;;  %v284_v1 = vld [vmem:[#allocation3 + $0x1f0] sm:$0xff] }
  0x40   :  { %v663_v60 = vpack.c.bf16 %v280_v59, %v278_v58  ;;  %v665_v63 = vpack.c.bf16 %v285_v62, %v283_v61  ;;  %v112_v6 = vld [vmem:[%s1279_s2] sm:$0x3]  ;;  %v382_v23 = vld [vmem:[%s1284_s7 + $0x8] sm:$0xff]  ;;  %v388_v29 = vld [vmem:[%s1284_s7 + $0x38] sm:$0xff] }
  0x41   :  { %636 = vmatpush1.bf16.msra.mxu1 %v635_v8  ;;  %v197_v10 = vld [vmem:[%s1280_s3] sm:$0x3]  ;;  %v386_v28 = vld [vmem:[%s1284_s7 + $0x28] sm:$0xff]  ;;  %v387_v33 = vld [vmem:[%s1284_s7 + $0x30] sm:$0xff] }
  0x42   :  { %584 = vmatpush1.bf16.msra.mxu0 %v583_v40  ;;  %638 = vmatprep.subr.bf16.mxu1 %v637_v9  ;;  %v268_v40 = vld [vmem:[#allocation3 + $0x170] sm:$0xff]  ;;  %v381_v25 = vld [vmem:[%s1284_s7] sm:$0xff]  ;;  %v398_v46 = vld [vmem:[%s1284_s7 + $0x88] sm:$0xff] }
  0x43   :  { %586 = vmatprep.subr.bf16.mxu0 %v585_v43  ;;  %v273_v43 = vld [vmem:[#allocation3 + $0x198] sm:$0xff]  ;;  %v651_v44 = vpack.c.bf16 %v268_v40, %v266_v39  ;;  %v391_v39 = vld [vmem:[%s1284_s7 + $0x50] sm:$0xff]  ;;  %v394_v40 = vld [vmem:[%s1284_s7 + $0x68] sm:$0xff] }
  0x44   :  { %v653_v45 = vpack.c.bf16 %v273_v43, %v271_v42  ;;  %v385_v32 = vld [vmem:[%s1284_s7 + $0x20] sm:$0xff]  ;;  %v392_v35 = vld [vmem:[%s1284_s7 + $0x58] sm:$0xff]  ;;  %v406_v58 = vld [vmem:[%s1284_s7 + $0xc8] sm:$0xff] }
  0x45   :  { %640 = vmatpush1.bf16.msra.mxu1 %v639_v20  ;;  %v675_v36 = vpack.c.bf16 %v387_v33, %v385_v32  ;;  %v400_v47 = vld [vmem:[%s1284_s7 + $0x98] sm:$0xff]  ;;  %v405_v62 = vld [vmem:[%s1284_s7 + $0xc0] sm:$0xff]  ;;  %v430_v33 = vld [vmem:[%s1284_s7 + $0x188] sm:$0xff] }
  0x46   :  { %588 = vmatpush1.bf16.msra.mxu0 %v587_v52  ;;  %642 = vmatprep.subr.bf16.mxu1 %v641_v21  ;;  %v274_v52 = vld [vmem:[#allocation3 + $0x1a0] sm:$0xff]  ;;  %v685_v49 = vpack.c.bf16 %v400_v47, %v398_v46  ;;  %v408_v59 = vld [vmem:[%s1284_s7 + $0xd8] sm:$0xff] }
  0x47   :  { %590 = vmatprep.subr.bf16.mxu0 %v589_v55  ;;  %v281_v55 = vld [vmem:[#allocation3 + $0x1d8] sm:$0xff]  ;;  %v659_v56 = vpack.c.bf16 %v276_v53, %v274_v52  ;;  %v402_v52 = vld [vmem:[%s1284_s7 + $0xa8] sm:$0xff]  ;;  %v693_v61 = vpack.c.bf16 %v408_v59, %v406_v58 }
  0x48   :  { %v661_v57 = vpack.c.bf16 %v281_v55, %v279_v54  ;;  %v404_v53 = vld [vmem:[%s1284_s7 + $0xb8] sm:$0xff]  ;;  %v437_v47 = vld [vmem:[%s1284_s7 + $0x1c0] sm:$0xff] }
  0x49   :  { %644 = vmatpush1.bf16.msra.mxu1 %v643_v30  ;;  %v689_v55 = vpack.c.bf16 %v404_v53, %v402_v52  ;;  %v440_v46 = vld [vmem:[%s1284_s7 + $0x1d8] sm:$0xff] }
  0x4a   :  { %592 = vmatpush1.bf16.msra.mxu0 %v591_v0  ;;  %646 = vmatprep.subr.bf16.mxu1 %v645_v31  ;;  %v282_v0 = vld [vmem:[#allocation3 + $0x1e0] sm:$0xff]  ;;  %v673_v31 = vpack.c.bf16 %v388_v29, %v386_v28  ;;  %v428_v28 = vld [vmem:[%s1284_s7 + $0x178] sm:$0xff] }
  0x4b   :  { %594 = vmatprep.subr.bf16.mxu0 %v593_v3  ;;  %v667_v2 = vpack.c.bf16 %v284_v1, %v282_v0  ;;  %v114_v3 = vlaneseq  ;;  %v410_v0 = vld [vmem:[%s1284_s7 + $0xe8] sm:$0xff]  ;;  %v412_v1 = vld [vmem:[%s1284_s7 + $0xf8] sm:$0xff] }
  0x4d   :  { %648 = vmatpush1.bf16.msra.mxu1 %v647_v37  ;;  %v115_v4 = vshrl.u32 %v114_v3, 7  ;;  %v697_v3 = vpack.c.bf16 %v412_v1, %v410_v0 }
  0x4e   :  { %596 = vmatpush1.bf16.msra.mxu0 %v595_v12  ;;  %650 = vmatprep.subr.bf16.mxu1 %v649_v38  ;;  %v389_v38 = vld [vmem:[%s1284_s7 + $0x40] sm:$0xff] }
  0x4f   :  { %598 = vmatprep.subr.bf16.mxu0 %v597_v15  ;;  %v1054_v5 = vsub.s32 0, %v115_v4  ;;  %v1059_v7 = vsub.s32 1, %v115_v4  ;;  %v679_v42 = vpack.c.bf16 %v391_v39, %v389_v38  ;;  %v409_v4 = vld [vmem:[%s1284_s7 + $0xe0] sm:$0xff]  ;;  %v434_v39 = vld [vmem:[%s1284_s7 + $0x1a8] sm:$0xff] }
  0x51   :  { %652 = vmatpush1.bf16.msra.mxu1 %v651_v44  ;;  %v117_v8 = vrot.slane %v112_v6, %v1054_v5  ;;  %v121_v9 = vrot.slane %v112_v6, %v1059_v7  ;;  %v202_v14 = vrot.slane %v197_v10, %v1054_v5  ;;  %v206_v16 = vrot.slane %v197_v10, %v1059_v7  ;;  %v393_v44 = vld [vmem:[%s1284_s7 + $0x60] sm:$0xff]  ;;  %v411_v6 = vld [vmem:[%s1284_s7 + $0xf0] sm:$0xff] }
  0x52   :  { %600 = vmatpush1.bf16.msra.mxu0 %v599_v24  ;;  %654 = vmatprep.subr.bf16.mxu1 %v653_v45  ;;  %v384_v24 = vld [vmem:[%s1284_s7 + $0x18] sm:$0xff]  ;;  %v395_v45 = vld [vmem:[%s1284_s7 + $0x70] sm:$0xff]  ;;  %v699_v10 = vpack.c.bf16 %v411_v6, %v409_v4 }
  0x53   :  { %602 = vmatprep.subr.bf16.mxu0 %v601_v27  ;;  %v669_v26 = vpack.c.bf16 %v384_v24, %v382_v23  ;;  %v383_v27 = vld [vmem:[%s1284_s7 + $0x10] sm:$0xff]  ;;  %v683_v48 = vpack.c.bf16 %v395_v45, %v393_v44  ;;  %v421_v24 = vld [vmem:[%s1284_s7 + $0x140] sm:$0xff]  ;;  %v438_v45 = vld [vmem:[%s1284_s7 + $0x1c8] sm:$0xff] }
  0x54   :  { %v671_v30 = vpack.c.bf16 %v383_v27, %v381_v25  ;;  %v423_v25 = vld [vmem:[%s1284_s7 + $0x150] sm:$0xff]  ;;  %v426_v27 = vld [vmem:[%s1284_s7 + $0x168] sm:$0xff] }
  0x55   :  { %656 = vmatpush1.bf16.msra.mxu1 %v655_v50  ;;  %v397_v50 = vld [vmem:[%s1284_s7 + $0x80] sm:$0xff]  ;;  %v713_v29 = vpack.c.bf16 %v428_v28, %v426_v27 }
  0x56   :  { %604 = vmatpush1.bf16.msra.mxu0 %v603_v34  ;;  %658 = vmatprep.subr.bf16.mxu1 %v657_v51  ;;  %v390_v34 = vld [vmem:[%s1284_s7 + $0x48] sm:$0xff]  ;;  %v399_v51 = vld [vmem:[%s1284_s7 + $0x90] sm:$0xff] }
  0x57   :  { %670 = vmatprep.subr.bf16.mxu0 %v669_v26  ;;  %v677_v37 = vpack.c.bf16 %v392_v35, %v390_v34  ;;  %v687_v54 = vpack.c.bf16 %v399_v51, %v397_v50  ;;  %v711_v26 = vpack.c.bf16 %v423_v25, %v421_v24  ;;  %v432_v34 = vld [vmem:[%s1284_s7 + $0x198] sm:$0xff]  ;;  %v442_v50 = vld [vmem:[%s1284_s7 + $0x1e8] sm:$0xff] }
  0x58   :  { %v717_v35 = vpack.c.bf16 %v432_v34, %v430_v33  ;;  %v444_v51 = vld [vmem:[%s1284_s7 + $0x1f8] sm:$0xff] }
  0x59   :  { %189 = vmatmul.mubr.f32.vlgmr.msra.gmra.mrb[0].mxu0 %v46_v41  ;;  %660 = vmatpush1.bf16.msra.mxu1 %v659_v56  ;;  %v396_v41 = vld [vmem:[%s1284_s7 + $0x78] sm:$0xff]  ;;  %v401_v56 = vld [vmem:[%s1284_s7 + $0xa0] sm:$0xff]  ;;  %v729_v53 = vpack.c.bf16 %v444_v51, %v442_v50 }
  0x5a   :  { %662 = vmatprep.subr.bf16.mxu1 %v661_v57  ;;  %672 = vmatpush1.bf16.msra.mxu0 %v671_v30  ;;  %v681_v43 = vpack.c.bf16 %v396_v41, %v394_v40  ;;  %v403_v57 = vld [vmem:[%s1284_s7 + $0xb0] sm:$0xff]  ;;  %v425_v30 = vld [vmem:[%s1284_s7 + $0x160] sm:$0xff]  ;;  %v436_v40 = vld [vmem:[%s1284_s7 + $0x1b8] sm:$0xff] }
  0x5b   :  { %674 = vmatprep.subr.bf16.mxu0 %v673_v31  ;;  %v427_v31 = vld [vmem:[%s1284_s7 + $0x170] sm:$0xff]  ;;  %v721_v41 = vpack.c.bf16 %v436_v40, %v434_v39 }
  0x5c   :  { %v715_v32 = vpack.c.bf16 %v427_v31, %v425_v30 }
  0x5d   :  { %664 = vmatpush1.bf16.msra.mxu1 %v663_v60  ;;  %v691_v60 = vpack.c.bf16 %v403_v57, %v401_v56  ;;  %v540_v57 = vld [vmem:[#allocation2] ss:$0 sm:$0xff] }
  0x5e   :  { %666 = vmatprep.subr.bf16.mxu1 %v665_v63  ;;  %676 = vmatpush1.bf16.msra.mxu0 %v675_v36  ;;  %v407_v63 = vld [vmem:[%s1284_s7 + $0xd0] sm:$0xff]  ;;  %v429_v36 = vld [vmem:[%s1284_s7 + $0x180] sm:$0xff] }
  0x5f   :  { %678 = vmatprep.subr.bf16.mxu0 %v677_v37  ;;  %v431_v37 = vld [vmem:[%s1284_s7 + $0x190] sm:$0xff] }
  0x60   :  { %v719_v38 = vpack.c.bf16 %v431_v37, %v429_v36 }
  0x61   :  { %668 = vmatpush1.bf16.msra.mxu1 %v667_v2  ;;  %v695_v2 = vpack.c.bf16 %v407_v63, %v405_v62 }
  0x62   :  { %680 = vmatpush1.bf16.msra.mxu0 %v679_v42  ;;  %v433_v42 = vld [vmem:[%s1284_s7 + $0x1a0] sm:$0xff] }
  0x63   :  { %682 = vmatprep.subr.bf16.mxu0 %v681_v43  ;;  %v435_v43 = vld [vmem:[%s1284_s7 + $0x1b0] sm:$0xff] }
  0x64   :  { %v723_v44 = vpack.c.bf16 %v435_v43, %v433_v42 }
  0x66   :  { %684 = vmatpush1.bf16.msra.mxu0 %v683_v48  ;;  %v725_v48 = vpack.c.bf16 %v440_v46, %v438_v45 }
  0x67   :  { %686 = vmatprep.subr.bf16.mxu0 %v685_v49  ;;  %v439_v49 = vld [vmem:[%s1284_s7 + $0x1d0] sm:$0xff] }
  0x68   :  { %v727_v52 = vpack.c.bf16 %v439_v49, %v437_v47 }
  0x6a   :  { %688 = vmatpush1.bf16.msra.mxu0 %v687_v54  ;;  %v441_v54 = vld [vmem:[%s1284_s7 + $0x1e0] sm:$0xff] }
  0x6b   :  { %690 = vmatprep.subr.bf16.mxu0 %v689_v55  ;;  %v443_v55 = vld [vmem:[%s1284_s7 + $0x1f0] sm:$0xff] }
  0x6c   :  { %v731_v56 = vpack.c.bf16 %v443_v55, %v441_v54 }
  0x6e   :  { %692 = vmatpush1.bf16.msra.mxu0 %v691_v60  ;;  %v286_v60 = vld [vmem:[%s1283_s6] sm:$0x3]  ;;  %s795_s6 = smov [#allocation6]  }
  0x6f   :  { %694 = vmatprep.subr.bf16.mxu0 %v693_v61  ;;  %v291_v61 = vrot.slane %v286_v60, %v1054_v5  ;;  %v295_v62 = vrot.slane %v286_v60, %v1059_v7 }
  0x72   :  { %696 = vmatpush1.bf16.msra.mxu0 %v695_v2 }
  0x73   :  { %698 = vmatprep.subr.bf16.mxu0 %v697_v3 }
  0x76   :  { %700 = vmatpush1.bf16.msra.mxu0 %v699_v10 }
 0x12c   :  { %v190_v11 = vpop.f32.mrb[0].mxu0 }
 0x12d   :  { %v191_v12 = vadd.f32 %v190_v11, %v117_v8  ;;  %v192_v13 = vpop.f32.mrb[1].mxu0  ;;  %v414_v8 = vld [vmem:[%s1284_s7 + $0x108] sm:$0xff] }
 0x12e   :  { %v193_v15 = vadd.f32 %v192_v13, %v121_v9  ;;  %v416_v9 = vld [vmem:[%s1284_s7 + $0x118] sm:$0xff]  ;;  %v415_v13 = vld [vmem:[%s1284_s7 + $0x110] sm:$0xff] }
 0x12f   :  { %v195_v17 = vmax.f32 %v191_v12, 0.0  ;;  %v701_v11 = vpack.c.bf16 %v416_v9, %v414_v8  ;;  %v413_v12 = vld [vmem:[%s1284_s7 + $0x100] sm:$0xff] }
 0x130   :  { %v196_v18 = vmax.f32 %v193_v15, 0.0  ;;  %v420_v15 = vld [vmem:[%s1284_s7 + $0x138] sm:$0xff] }
 0x131   :  { %v209_v19 = vmul.f32 %v202_v14, %v195_v17  ;;  %v418_v14 = vld [vmem:[%s1284_s7 + $0x128] sm:$0xff]  ;;  %702 = vmatprep.subr.bf16.mxu0 %v701_v11 }
 0x132   :  { %362 = vmatprep.mubr.f32.mxu1 %v196_v18  ;;  %v210_v20 = vmul.f32 %v206_v16, %v196_v18  ;;  %v703_v16 = vpack.c.bf16 %v415_v13, %v413_v12  ;;  %v417_v18 = vld [vmem:[%s1284_s7 + $0x120] sm:$0xff] }
 0x133   :  { %363 = vmatmul.mubr.f32.vlgmr.msra.gmra.mrb[0].mxu1 %v195_v17  ;;  %v705_v17 = vpack.c.bf16 %v420_v15, %v418_v14 }
 0x134   :  { %v211_v21 = vadd.f32 %v210_v20, %v209_v19  ;;  %v419_v19 = vld [vmem:[%s1284_s7 + $0x130] sm:$0xff]  ;;  %v422_v20 = vld [vmem:[%s1284_s7 + $0x148] sm:$0xff]  ;;  %704 = vmatpush1.bf16.msra.mxu0 %v703_v16 }
 0x135   :  { %v707_v22 = vpack.c.bf16 %v419_v19, %v417_v18  ;;  %706 = vmatprep.subr.bf16.mxu0 %v705_v17 }
 0x136   :  { %212 = vadd.xlane.f32.xlu0 %v211_v21  ;;  %v424_v21 = vld [vmem:[%s1284_s7 + $0x158] sm:$0xff]  ;;  %s531_s7 = sshll.u32 %s795_s6, 4  ;;  %s532_s7 = int_to_ptr.vmem [resolvable:$true] %s531_s7 }
 0x137   :  { %v709_v23 = vpack.c.bf16 %v424_v21, %v422_v20  ;;  %s765_s26 = scalar_lea.vmem %s532_s7, 256  ;;  %p770_p9 = scmp.lt.s32.totalorder %s532_s7, %s532_s7 }
 0x138   :  { %708 = vmatpush1.bf16.msra.mxu0 %v707_v22  ;;  %p766_p8 = scmp.ne.s32.totalorder %s532_s7, %s765_s26  ;;  %p771_p10 = scmp.lt.s32.totalorder %s765_s26, %s765_s26 }
 0x139   :  { %710 = vmatprep.subr.bf16.mxu0 %v709_v23 }
 0x13a   :  { %p772_p11 = por %p771_p10, %p770_p9 }
 0x13c   :  { %712 = vmatpush1.bf16.msra.mxu0 %v711_v26  ;;  %p773_p12 = pnand %p772_p11, %p766_p8 }
 0x13d   :  { %714 = vmatprep.subr.bf16.mxu0 %v713_v29 }
 0x140   :  { %716 = vmatpush1.bf16.msra.mxu0 %v715_v32 }
 0x141   :  { %718 = vmatprep.subr.bf16.mxu0 %v717_v35 }
 0x144   :  { %720 = vmatpush1.bf16.msra.mxu0 %v719_v38 }
 0x145   :  { %722 = vmatprep.subr.bf16.mxu0 %v721_v41 }
 0x148   :  { %724 = vmatpush1.bf16.msra.mxu0 %v723_v44 }
 0x149   :  { %726 = vmatprep.subr.bf16.mxu0 %v725_v48 }
 0x14c   :  { %728 = vmatpush1.bf16.msra.mxu0 %v727_v52 }
 0x14d   :  { %730 = vmatprep.subr.bf16.mxu0 %v729_v53 }
 0x150   :  { %732 = vmatpush1.bf16.msra.mxu0 %v731_v56 }
 0x1c3   :  { %v213_v58 = vpop.xlane.xlu0 %212 }
 0x1c4   :  { %v221_v59 = vadd.f32 %v540_v57, %v213_v58 }
 0x1c6   :  { %518 = vperm.xlu0 %738, %v221_v59  }
 0x206   :  { %v364_v63 = vpop.f32.mrb[0].mxu1 }
 0x207   :  { %v365_v0 = vadd.f32 %v364_v63, %v291_v61  ;;  %v366_v1 = vpop.f32.mrb[1].mxu1 }
 0x208   :  { %v367_v2 = vadd.f32 %v366_v1, %v295_v62 }
 0x209   :  { %v373_v3 = vmin.f32 %v365_v0, 0.0  ;;  %v371_v12 = vadd.f32 1.0, %v365_v0  ;;  %vm369_vm1 = vcmp.gt.f32.partialorder %v365_v0, 0.0 }
 0x20a   :  { %v374_v4 = vmin.f32 %v367_v2, 0.0  ;;  %v372_v10 = vadd.f32 1.0, %v367_v2  ;;  %vm370_vm0 = vcmp.gt.f32.partialorder %v367_v2, 0.0 }
 0x20b   :  { %v375_v6 = vmul.f32 1.442695, %v373_v3 }
 0x20c   :  { %v377_v8 = vmul.f32 1.442695, %v374_v4 }
 0x20d   :  { %739 = vpow2.f32 %v375_v6 }
 0x20e   :  { %741 = vpow2.f32 %v377_v8 }
 0x217   :  { %v740_v9 = vpop.eup %739 }
 0x218   :  { %v742_v11 = vpop.eup %741  ;;  %v379_v5 = vsel %vm369_vm1, %v371_v12, %v740_v9 }
 0x219   :  { %v380_v13 = vsel %vm370_vm0, %v372_v10, %v742_v11 }
 0x21a   :  { %509 = vmatprep.mubr.f32.mxu0 %v380_v13 }
 0x21b   :  { %510 = vmatmul.mubr.f32.vlgmr.msra.gmra.mrb[2].mxu0 %v379_v5 }
 0x245   :  { %v519_v7 = vpop.permute.xlu0 %518 }
 0x2ee   :  { %v511_v14 = vpop.f32.mrb[2].mxu0 }
 0x2ef   :  { %v521_v15 = vadd.f32 %v519_v7, %v511_v14  ;;  %v513_v16 = vpop.f32.mrb[3].mxu0 }
 0x2f0   :  { %v522_v17 = vadd.f32 %v519_v7, %v513_v16 }
 0x2f1   :  { %523 = vst [vmem:[#allocation6] sm:$0xff] %v521_v15 }
 0x2f2   :  { %524 = vst [vmem:[#allocation6 + $0x8] sm:$0xff] %v522_v17 }
 0x2f3   :  { %776 = shalt.err (!%p773_p12)
}
 0x2f4   :  { %s777_s28 = scalar_lea.hbm %s1285_s8, 256 }
 0x2f5   :  { %p778_p13 = scmp.ne.s32.totalorder %s1285_s8, %s777_s28  ;;  %p781_p0 = scmp.lt.u32.totalorder %s777_s28, %s1285_s8 }
 0x2f7   :  { %p783_p1 = pnand %p781_p0, %p778_p13 }
 0x2f9   :  { %786 = shalt.err (!%p783_p1)
}
 0x2fa   :  { %534 = dma.vmem_to_hbm [thread:$0]  %s532_s7, 256, %s1285_s8, [#allocation5]  }
 0x2fb   :  { %789 = dma.done.wait [#allocation5], 256  }
 0x2fc   :  { %790 = vsyncadd [#allocation5], 4294967040 }
 0x2fd   :  { %538 = vsyncpa [#allocation4], 1 }
 0x2fe   :  { %539 = vsyncpa [#allocation5], 1 }

</bundles_post_ra>
